<compile_context>
chip_gen: v7x
topology: tpu7x:2x2x1
jax: 0.10.0
libtpu: 0.0.40
codegen_flags: <defaults>
</compile_context>

<pallas_src>
import functools
import math

import jax
import jax.numpy as jnp
from jax import lax
from jax.experimental import pallas as pl
from jax.experimental.pallas import tpu as pltpu


# Tile targets: 256-aligned (fills the 256x256 MXU on v6e/v7x in full pushes
# and is a multiple of 128 so v5e's 4x128^2 MXU stays fully fed).  tq > tk
# because the projected K/V stream is re-read S1/tq times.
_TQ_TARGET = 512
_TK_TARGET = 256
# Explicit scoped-VMEM limit (defaults are 16 MiB v5e / 32 MiB v6e,v7x);
# 64 MiB is <= physical VMEM on every generation (128/128/64 MiB).
_VMEM_LIMIT_BYTES = 64 * 1024 * 1024


def _round_up(n, m):
    return ((n + m - 1) // m) * m


def _exp_dtype_for_backend():
    """bf16 EUP exists on v6e/v7x; keep exp in f32 on v5e / unknown chips."""
    try:
        kind = jax.devices()[0].device_kind.lower()
    except Exception:
        return jnp.float32
    if "v6" in kind or "v7" in kind:
        return jnp.bfloat16
    return jnp.float32


# ---------------------------------------------------------------------------
# Projection kernel:  y = x @ W + b   (W pre-transposed to [d_model, d_out]).
# Runs once per tensor; weight/bias blocks are grid-invariant (resident).
# ---------------------------------------------------------------------------
def _linear_kernel(x_ref, w_ref, b_ref, o_ref, *, compute_dtype):
    x = x_ref[0].astype(compute_dtype)                     # (ts, Dm) bf16
    y = jnp.dot(x, w_ref[...], preferred_element_type=jnp.float32)
    y = y + b_ref[...]                                     # f32 bias add
    o_ref[0] = y.astype(o_ref.dtype)


def _project(x, w, b, ts, out_dtype, compute_dtype):
    """x: (B, S, Dm) -> (B, S, d_out), tiled over (B, S // ts)."""
    B, S, Dm = x.shape
    dout = w.shape[1]
    grid = (B, S // ts)
    return pl.pallas_call(
        functools.partial(_linear_kernel, compute_dtype=compute_dtype),
        out_shape=jax.ShapeDtypeStruct((B, S, dout), out_dtype),
        grid_spec=pltpu.PrefetchScalarGridSpec(
            num_scalar_prefetch=0,
            grid=grid,
            in_specs=[
                pl.BlockSpec((1, ts, Dm), lambda bi, si: (bi, si, 0)),
                # Constant blocks: index_map never changes -> stay resident.
                pl.BlockSpec((Dm, dout), lambda bi, si: (0, 0)),
                pl.BlockSpec((1, dout), lambda bi, si: (0, 0)),
            ],
            out_specs=pl.BlockSpec((1, ts, dout), lambda bi, si: (bi, si, 0)),
        ),
        compiler_params=pltpu.CompilerParams(
            dimension_semantics=("parallel", "parallel"),
            vmem_limit_bytes=_VMEM_LIMIT_BYTES),
    )(x, w, b)


# ---------------------------------------------------------------------------
# Flash attention kernel over already-projected Q/K/V.
# grid = (B, S1p//tq, S2p//tk); kv axis innermost ("arbitrary").
# ---------------------------------------------------------------------------
def _flash_kernel(q_ref, k_ref, v_ref, o_ref, m_ref, l_ref, acc_ref, *,
                  tk, kv_valid_len, exp_dtype):
    ki = pl.program_id(2)
    nk = pl.num_programs(2)

    @pl.when(ki == 0)
    def _():
        m_ref[...] = jnp.full(m_ref.shape, -jnp.inf, m_ref.dtype)
        l_ref[...] = jnp.zeros(l_ref.shape, l_ref.dtype)
        acc_ref[...] = jnp.zeros(acc_ref.shape, acc_ref.dtype)

    q = q_ref[0]                                   # (tq, dqp) bf16, pre-scaled
    k = k_ref[0]                                   # (tk, dqp) bf16
    v = v_ref[0]                                   # (tk, dvp) bf16

    # Scores: contract head dims directly (no explicit k.T through the XLU).
    s = lax.dot_general(q, k, (((1,), (1,)), ((), ())),
                        preferred_element_type=jnp.float32)   # (tq, tk) f32

    if kv_valid_len is not None:
        # Static branch, only emitted when S2 was padded: mask the padded kv
        # tail so it contributes nothing to the softmax.
        col = ki * tk + lax.broadcasted_iota(jnp.int32, s.shape, 1)
        s = jnp.where(col < kv_valid_len, s, -1e30)

    # TODO(synk): optional attention `mask` argument of the PyTorch module is
    # not wired in (mask=None path only).

    # Online softmax update (bookkeeping in f32; exp in exp_dtype).
    m_prev = m_ref[...]
    m_new = jnp.maximum(m_prev, jnp.max(s, axis=-1, keepdims=True))
    alpha = jnp.exp(m_prev - m_new)
    p = jnp.exp((s - m_new).astype(exp_dtype))
    l_ref[...] = alpha * l_ref[...] + jnp.sum(
        p.astype(jnp.float32), axis=-1, keepdims=True)
    acc_ref[...] = alpha * acc_ref[...] + jnp.dot(
        p.astype(v.dtype), v, preferred_element_type=jnp.float32)
    m_ref[...] = m_new

    @pl.when(ki == nk - 1)
    def _():
        # Exact divide: runs once per (b, q-tile); approx reciprocal buys
        # nothing here.
        o_ref[0] = (acc_ref[...] / l_ref[...]).astype(o_ref.dtype)


def _flash_attention(q, k, v, *, tq, tk, kv_valid_len, out_dtype, exp_dtype):
    B, S1p, dqp = q.shape
    _, S2p, dvp = v.shape
    grid = (B, S1p // tq, S2p // tk)
    kernel = functools.partial(_flash_kernel, tk=tk,
                               kv_valid_len=kv_valid_len, exp_dtype=exp_dtype)
    return pl.pallas_call(
        kernel,
        out_shape=jax.ShapeDtypeStruct((B, S1p, dvp), out_dtype),
        grid_spec=pltpu.PrefetchScalarGridSpec(
            num_scalar_prefetch=0,
            grid=grid,
            in_specs=[
                pl.BlockSpec((1, tq, dqp), lambda b, qi, ki: (b, qi, 0)),
                pl.BlockSpec((1, tk, dqp), lambda b, qi, ki: (b, ki, 0)),
                pl.BlockSpec((1, tk, dvp), lambda b, qi, ki: (b, ki, 0)),
            ],
            out_specs=pl.BlockSpec((1, tq, dvp), lambda b, qi, ki: (b, qi, 0)),
            scratch_shapes=[
                pltpu.VMEM((tq, 1), jnp.float32),     # running max m
                pltpu.VMEM((tq, 1), jnp.float32),     # running sum l
                pltpu.VMEM((tq, dvp), jnp.float32),   # output accumulator
            ],
        ),
        compiler_params=pltpu.CompilerParams(
            dimension_semantics=("parallel", "parallel", "arbitrary"),
            vmem_limit_bytes=_VMEM_LIMIT_BYTES),
    )(q, k, v)


# ---------------------------------------------------------------------------
# Public wrapper (forward of the PyTorch SelfAttention module).
# ---------------------------------------------------------------------------
def self_attention(inp_q, inp_k, inp_v, params, mask=None):
    """inp_q: (B, S1, d_model); inp_k/inp_v: (B, S2, d_model).

    params holds pre-transposed weights w* of shape [d_model, d_out] and
    biases b* of shape [1, d_out] (equivalent to nn.Linear's x @ W.T + b).
    """
    assert mask is None, "TODO(synk): optional attention mask not implemented"

    wq, bq = params["wq"], params["bq"]
    wk, bk = params["wk"], params["bk"]
    wv, bv = params["wv"], params["bv"]

    B, S1, Dm = inp_q.shape
    _, S2, _ = inp_k.shape
    d_q = wq.shape[1]
    d_v = wv.shape[1]
    out_dtype = inp_q.dtype
    # bf16 MXU operands (f32 accumulation everywhere): 2-4x MXU rate and half
    # the projected-K/V HBM stream vs f32.
    compute_dtype = jnp.bfloat16
    exp_dtype = _exp_dtype_for_backend()

    # Lane-dense head dims: zero-pad d_q/d_v to multiples of 128 (exact math;
    # zero columns contribute nothing to scores or outputs) so projected
    # Q/K/V and the attention output are stored with unmasked vst.
    dqp = _round_up(d_q, 128)
    dvp = _round_up(d_v, 128)
    scale = 1.0 / math.sqrt(d_q)

    def pad_cols(a, n):
        a = a.reshape((1, -1)) if a.ndim == 1 else a
        return jnp.pad(a, ((0, 0), (0, n - a.shape[-1])))

    wq_p = (pad_cols(wq, dqp) * scale).astype(compute_dtype)  # scale folded in
    bq_p = (pad_cols(bq, dqp) * scale).astype(jnp.float32)
    wk_p = pad_cols(wk, dqp).astype(compute_dtype)
    bk_p = pad_cols(bk, dqp).astype(jnp.float32)
    wv_p = pad_cols(wv, dvp).astype(compute_dtype)
    bv_p = pad_cols(bv, dvp).astype(jnp.float32)

    # Sequence tiling: full extent when short (always a legal block),
    # otherwise 512/256-aligned tiles with zero padding; padded kv positions
    # are masked inside the flash kernel (no silent truncation).
    if S1 <= _TQ_TARGET:
        tq, S1p = S1, S1
    else:
        tq = _TQ_TARGET
        S1p = _round_up(S1, tq)
    if S2 <= _TK_TARGET:
        tk, S2p = S2, S2
    else:
        tk = _TK_TARGET
        S2p = _round_up(S2, tk)

    xq = inp_q if S1p == S1 else jnp.pad(inp_q, ((0, 0), (0, S1p - S1), (0, 0)))
    xk = inp_k if S2p == S2 else jnp.pad(inp_k, ((0, 0), (0, S2p - S2), (0, 0)))
    xv = inp_v if S2p == S2 else jnp.pad(inp_v, ((0, 0), (0, S2p - S2), (0, 0)))
    kv_valid_len = None if S2p == S2 else S2

    # Q/K/V projections computed exactly once each (not re-done per q-tile
    # inside the attention kv loop); outputs stored in bf16.
    q = _project(xq, wq_p, bq_p, tq, compute_dtype, compute_dtype)
    k = _project(xk, wk_p, bk_p, tk, compute_dtype, compute_dtype)
    v = _project(xv, wv_p, bv_p, tk, compute_dtype, compute_dtype)

    out = _flash_attention(q, k, v, tq=tq, tk=tk, kv_valid_len=kv_valid_len,
                           out_dtype=out_dtype, exp_dtype=exp_dtype)

    # Drop padded query rows / value columns.
    return out[:, :S1, :d_v]


# ---------------------------------------------------------------------------
# Parameters, reference, and self-test.
# ---------------------------------------------------------------------------
def make_params(key, d_model, d_q, d_k, d_v):
    assert d_q == d_k, "d_q not equal d_k"
    ks = jax.random.split(key, 6)
    lim = 1.0 / math.sqrt(d_model)
    u = lambda k, shape: jax.random.uniform(k, shape, jnp.float32, -lim, lim)
    return {
        "wq": u(ks[0], (d_model, d_q)),
        "bq": u(ks[1], (1, d_q)),
        "wk": u(ks[2], (d_model, d_q)),
        "bk": u(ks[3], (1, d_q)),
        "wv": u(ks[4], (d_model, d_v)),
        "bv": u(ks[5], (1, d_v)),
    }


def _reference(inp_q, inp_k, inp_v, params):
    q = inp_q @ params["wq"] + params["bq"]
    k = inp_k @ params["wk"] + params["bk"]
    v = inp_v @ params["wv"] + params["bv"]
    scores = jnp.einsum("bqd,bkd->bqk", q, k) / jnp.sqrt(jnp.float32(q.shape[-1]))
    w = jax.nn.softmax(scores, axis=-1)
    return jnp.einsum("bqk,bkd->bqd", w, v)


def _run_case(key, B, S1, S2, d_model, d_q, d_k, d_v, atol, rtol):
    k_params, k_q, k_k, k_v = jax.random.split(key, 4)
    params = make_params(k_params, d_model, d_q, d_k, d_v)
    inp_q = jax.random.normal(k_q, (B, S1, d_model), jnp.float32)
    inp_k = jax.random.normal(k_k, (B, S2, d_model), jnp.float32)
    inp_v = jax.random.normal(k_v, (B, S2, d_model), jnp.float32)

    out = jax.block_until_ready(self_attention(inp_q, inp_k, inp_v, params))
    ref = _reference(inp_q, inp_k, inp_v, params)

    assert out.shape == (B, S1, d_v)
    assert jnp.allclose(out, ref, atol=atol, rtol=rtol), (
        f"mismatch: max abs diff {jnp.max(jnp.abs(out - ref))}")


if __name__ == "__main__":
    key = jax.random.PRNGKey(0)
    k0, k1, k2 = jax.random.split(key, 3)

    # Tolerances cover bf16 MXU operands / bf16 projected Q-K-V storage.
    # Small case matching the module spec (single tile, trivial grid).
    _run_case(k0, B=2, S1=8, S2=8, d_model=32, d_q=16, d_k=16, d_v=16,
              atol=2e-2, rtol=2e-2)

    # Larger case with seq_len_1 != seq_len_2 and padded (64 -> 128) head dims.
    _run_case(k1, B=2, S1=128, S2=256, d_model=128, d_q=64, d_k=64, d_v=64,
              atol=2e-2, rtol=2e-2)

    # Multi-kv-tile online softmax with a padded/masked kv tail
    # (S2=300 -> two kv tiles of 256, second partially masked).
    _run_case(k2, B=2, S1=96, S2=300, d_model=64, d_q=32, d_k=32, d_v=48,
              atol=2e-2, rtol=2e-2)

    print("KERNEL_OK")
</pallas_src>

<mosaic_0001>
module attributes {stable_mosaic.version = 11 : i64} {
  func.func @_linear_kernel(%arg0: i32, %arg1: i32, %arg2: memref<1x8x32xf32, #tpu.memory_space<vmem>>, %arg3: memref<32x128xbf16, #tpu.memory_space<vmem>>, %arg4: memref<1x128xf32, #tpu.memory_space<vmem>>, %arg5: memref<1x8x128xbf16, #tpu.memory_space<vmem>>) attributes {dimension_semantics = [#tpu.dimension_semantics<parallel>, #tpu.dimension_semantics<parallel>], iteration_bounds = array<i64: 2, 1>, scalar_prefetch = 0 : i64, scratch_operands = 0 : i64, tpu.core_type = #tpu.core_type<tc>, window_params = [{transform_indices = @transform_0, window_bounds = array<i64: 1, 8, 32>}, {pipeline_mode = #tpu.pipeline_mode<synchronous>, transform_indices = @transform_1, window_bounds = array<i64: 32, 128>}, {pipeline_mode = #tpu.pipeline_mode<synchronous>, transform_indices = @transform_2, window_bounds = array<i64: 1, 128>}, {transform_indices = @transform_3, window_bounds = array<i64: 1, 8, 128>}]} {
    %c0 = arith.constant 0 : index
    %c0_0 = arith.constant 0 : index
    %c0_1 = arith.constant 0 : index
    %0 = vector.load %arg2[%c0, %c0_0, %c0_1] : memref<1x8x32xf32, #tpu.memory_space<vmem>>, vector<1x8x32xf32>
    %1 = vector.shape_cast %0 : vector<1x8x32xf32> to vector<8x32xf32>
    %2 = arith.truncf %1 : vector<8x32xf32> to vector<8x32xbf16>
    %c0_2 = arith.constant 0 : index
    %c0_3 = arith.constant 0 : index
    %3 = vector.load %arg3[%c0_2, %c0_3] : memref<32x128xbf16, #tpu.memory_space<vmem>>, vector<32x128xbf16>
    %cst = arith.constant dense<0.000000e+00> : vector<8x128xf32>
    %4 = tpu.matmul %2, %3, %cst {dimension_numbers = #tpu.dot_dimension_numbers<[1], [0], [0], [1], [0, 0, 1, 1], [], []>} : vector<8x32xbf16>, vector<32x128xbf16>, vector<8x128xf32> -> vector<8x128xf32>
    %c0_4 = arith.constant 0 : index
    %c0_5 = arith.constant 0 : index
    %5 = vector.load %arg4[%c0_4, %c0_5] : memref<1x128xf32, #tpu.memory_space<vmem>>, vector<1x128xf32>
    %6 = vector.broadcast %5 : vector<1x128xf32> to vector<8x128xf32>
    %7 = arith.addf %4, %6 : vector<8x128xf32>
    %8 = arith.truncf %7 : vector<8x128xf32> to vector<8x128xbf16>
    %c0_6 = arith.constant 0 : index
    %c0_7 = arith.constant 0 : index
    %c0_8 = arith.constant 0 : index
    %9 = vector.load %arg5[%c0_6, %c0_7, %c0_8] : memref<1x8x128xbf16, #tpu.memory_space<vmem>>, vector<1x8x128xbf16>
    %10 = vector.shape_cast %9 : vector<1x8x128xbf16> to vector<8x128xbf16>
    %11 = vector.shape_cast %8 : vector<8x128xbf16> to vector<1x8x128xbf16>
    tpu.vector_store %arg5[%c0_6, %c0_7, %c0_8], %11 {strides = array<i32>} : memref<1x8x128xbf16, #tpu.memory_space<vmem>>, vector<1x8x128xbf16>,
    return
  }
  func.func @transform_0(%arg0: i32, %arg1: i32) -> (i32, i32, i32) {
    %c0_i32 = arith.constant 0 : i32
    %c0_i32_0 = arith.constant 0 : i32
    return %arg0, %arg1, %c0_i32 : i32, i32, i32
  }
  func.func @transform_1(%arg0: i32, %arg1: i32) -> (i32, i32) {
    %c0_i32 = arith.constant 0 : i32
    %c0_i32_0 = arith.constant 0 : i32
    %c0_i32_1 = arith.constant 0 : i32
    return %c0_i32, %c0_i32_0 : i32, i32
  }
  func.func @transform_2(%arg0: i32, %arg1: i32) -> (i32, i32) {
    %c0_i32 = arith.constant 0 : i32
    %c0_i32_0 = arith.constant 0 : i32
    %c0_i32_1 = arith.constant 0 : i32
    return %c0_i32, %c0_i32_0 : i32, i32
  }
  func.func @transform_3(%arg0: i32, %arg1: i32) -> (i32, i32, i32) {
    %c0_i32 = arith.constant 0 : i32
    %c0_i32_0 = arith.constant 0 : i32
    return %arg0, %arg1, %c0_i32 : i32, i32, i32
  }
}

</mosaic_0001>

<bundles_post_ra>
// kernel: tpu_custom_call.1
= control target key start
LH: loop header
LB: loop body
LE: loop exit
PB: predicated region body
PF: predicated region fallthrough
CT: control target
= control target key end

     0   :  { %8 = vsyncpa [#allocation3], 0  ;;  %s991_s0 = inlined_call_operand.hbm [shape: f32[2,8,32], index: 0, kind: input, shape index: {}]   ;;  %s992_s1 = inlined_call_operand.hbm [shape: bf16[32,128], index: 1, kind: input, shape index: {}]   ;;  %s993_s2 = inlined_call_operand.hbm [shape: f32[1,128], index: 2, kind: input, shape index: {}]   ;;  %s994_s3 = inlined_call_operand.hbm [shape: bf16[2,8,128], index: 3, kind: output, shape index: {}]  }
   0x1   :  { %10 = vsyncpa [#allocation3 + $0x1], 0 }
   0x2   :  { %11 = vsyncpa [#allocation6], 0 }
   0x3   :  { %12 = vsyncpa [#allocation4], 0 }
   0x4   :  { %14 = vsyncpa [#allocation4 + $0x1], 0  ;;  %s739_s12 = smov 0   ;;  %s741_s13 = smov 0  }
   0x5   :  { %s743_s14 = smov 0   ;;  %s745_s15 = smov 0  }
   0x6   :  { %s747_s16 = smov 0   ;;  %s749_s17 = smov 0  }
   0x7 LB: > { %s416_s18 = sadd.s32 4294967295, %s709_s17   ;;  %s417_s19 = sadd.s32 4294967294, %s709_s17   ;;  %s709_s17 = sphi %s749_s17, %s20_s17   ;;  %s705_s16 = sphi %s747_s16, %s1016_s16   ;;  %s701_s15 = sphi %s745_s15, %s1015_s15   ;;  %s697_s14 = sphi %s743_s14, %s1014_s14   ;;  %s693_s13 = sphi %s741_s13, %s1013_s13   ;;  %s689_s12 = sphi %s739_s12, %s1012_s12  }
   0x8   : > { %p54_p0 = scmp.ne.s32.totalorder %s693_s13, %s689_s12  ;;  %p773_p1 = scmp.eq.s32.totalorder %s416_s18, 0 }
   0x9   : > { %p777_p2 = scmp.eq.s32.totalorder %s416_s18, 1  ;;  %p128_p3 = scmp.eq.s32.totalorder %s417_s19, 1 }
   0xa   : > { %s999_s20 = scalar_select %p773_p1, 1, 0 }
   0xb   : > { %p783_p4 = por %p773_p1, %p54_p0  ;;  %p418_p5 = scmp.ge.s32.totalorder %s709_s17, 1 }
   0xc   : > { %p788_p6 = por %p128_p3, %p54_p0  ;;  %p135_p7 = scmp.lt.s32.totalorder %s709_s17, 3 }
   0xd   : > { %s1001_s22 = scalar_select %p783_p4, 1, 0 }
   0xe   : > { %s1002_s23 = scalar_select %p788_p6, 1, 0 }
   0xf   : > { %p793_p8 = pnand %p418_p5, %p135_p7  ;;  %s711_s25 = smov [#allocation5]  }
  0x10   : > { %s147_s26 = sshll.u32 %s711_s25, 4  ;;  %s712_s28 = smov [#allocation7]   ;;  %s797_s26 = int_to_ptr.vmem [resolvable:$true] %s147_s26 }
  0x11   : > { %p460_p9 = pneg %p793_p8  ;;  %s161_s29 = sshll.u32 %s712_s28, 4  ;;  %s808_s29 = int_to_ptr.vmem [resolvable:$true] %s161_s29 }
  0x12   : > { %s537_s5 = scalar_lea.hbm %s992_s1, 256 }
  0x13   : > { %p804_p11 = pnand %p460_p9, %p773_p1  ;;  %p538_p12 = scmp.ne.s32.totalorder %s992_s1, %s537_s5 }
  0x14   : > { %p544_p5 = scmp.lt.u32.totalorder %s537_s5, %s992_s1 }
  0x15   : > { %p539_p13 = pneg %p804_p11 }
  0x17   : > { %p540_p0 = pnand %p539_p13, %p538_p12 }
  0x19   : > { %p541_p3 = pneg %p540_p0 }
  0x1b   : > { %p546_p7 = pnand %p544_p5, %p541_p3 }
  0x1d   : > { %549 = shalt.err (!%p546_p7)
}
  0x1e   : > { %s550_s10 = scalar_lea.vmem %s797_s26, 256  ;;  %p558_p1 = scmp.lt.s32.totalorder %s797_s26, %s797_s26 }
  0x1f   : > { %p551_p9 = scmp.ne.s32.totalorder %s797_s26, %s550_s10  ;;  %p559_p12 = scmp.lt.s32.totalorder %s550_s10, %s550_s10 }
  0x21   : > { %p553_p10 = pnand %p551_p9, %p539_p13  ;;  %p560_p0 = por %p559_p12, %p558_p1 }
  0x23   : > { %p554_p6 = pneg %p553_p10 }
  0x25   : > { %p561_p4 = pnand %p560_p0, %p554_p6 }
  0x27   : > { %564 = shalt.err (!%p561_p4)
}
  0x28   : > { %s713_s11 = smov 64   ;;  %s714_s18 = smov 4  }
  0x29   : > { %463 = dma.hbm_to_vmem [thread:$0]  (!%p804_p11), %s992_s1, 256, %s797_s26, [#allocation6], %s713_s11, %s713_s11, %s714_s18  }
  0x2a   : > { %s565_s4 = scalar_lea.hbm %s993_s2, 16 }
  0x2b   : > { %p566_p1 = scmp.ne.s32.totalorder %s993_s2, %s565_s4  ;;  %p572_p10 = scmp.lt.u32.totalorder %s565_s4, %s993_s2 }
  0x2d   : > { %p568_p4 = pnand %p566_p1, %p539_p13 }
  0x2f   : > { %p569_p6 = pneg %p568_p4 }
  0x31   : > { %p574_p3 = pnand %p572_p10, %p569_p6 }
  0x33   : > { %577 = shalt.err (!%p574_p3)
}
  0x34   : > { %s578_s26 = scalar_lea.vmem %s808_s29, 16  ;;  %s585_s9 = scalar_lea.vmem %s808_s29, 32 }
  0x35   : > { %p579_p5 = scmp.ne.s32.totalorder %s808_s29, %s578_s26  ;;  %p586_p12 = scmp.lt.s32.totalorder %s808_s29, %s808_s29 }
  0x36   : > { %p587_p0 = scmp.lt.s32.totalorder %s585_s9, %s578_s26 }
  0x37   : > { %p581_p7 = pnand %p579_p5, %p539_p13 }
  0x38   : > { %p588_p1 = por %p587_p0, %p586_p12 }
  0x39   : > { %p582_p9 = pneg %p581_p7 }
  0x3b   : > { %p589_p4 = pnand %p588_p1, %p582_p9 }
  0x3d   : > { %592 = shalt.err (!%p589_p4)
}
  0x3e   : > { %466 = dma.hbm_to_vmem [thread:$0]  (!%p804_p11), %s993_s2, 16, %s808_s29, [#allocation6]  }
  0x3f   : > { %s32_s18 = sadd.s32 1, %s705_s16  ;;  %s41_s19 = sadd.s32 1, %s697_s14 }
  0x40   : > { %p34_p13 = scmp.ge.s32.totalorder %s32_s18, 2  ;;  %p48_p6 = scmp.ne.s32.totalorder %s697_s14, %s693_s13 }
  0x41   : > { %p49_p10 = scmp.eq.s32.totalorder %s709_s17, 0  ;;  %p477_p3 = scmp.lt.s32.totalorder %s709_s17, 2 }
  0x42   : > { %s1018_s18 = smov (%p34_p13, %s32_s18), 0  ;;  %p873_p7 = por %p777_p2, %p48_p6 }
  0x43   : > { %p50_p5 = por %p49_p10, %p48_p6  ;;  %s36_s25 = ssub.s32 %s705_s16, %s1018_s18 }
  0x44   : > { %s1005_s27 = scalar_select %p873_p7, 1, 0 }
  0x45   : > { %s172_s28 = sand.u32 1, %s697_s14   ;;  %p39_p9 = scmp.eq.s32.totalorder %s36_s25, 0 }
  0x46   : > { %s422_s29 = sshll.u32 %s172_s28, 3  ;;  %s423_s30 = sshll.u32 %s705_s16, 7 }
  0x47   : > { %s882_s4 = scalar_select %p39_p9, %s697_s14, %s41_s19  }
  0x48   : > { %s887_s7 = scalar_lea.hbm %s991_s0, %s423_s30  ;;  %s176_s21 = scalar_lea.vmem [#allocation2], %s422_s29 }
  0x49   : > { %s184_s8 = sshll.u32 %s176_s21, 4  ;;  %p891_p2 = pnand %p477_p3, %p50_p5  ;;  %s895_s8 = int_to_ptr.vmem [resolvable:$true] %s184_s8 }
  0x4a   : > { %s173_s9 = scalar_lea.sflag [#allocation3], %s172_s28  ;;  %s593_s10 = scalar_lea.hbm %s887_s7, 128 }
  0x4b   : > { %p594_p11 = scmp.ne.s32.totalorder %s887_s7, %s593_s10  ;;  %p595_p12 = pneg %p891_p2 }
  0x4c   : > { %s598_s25 = scalar_lea.hbm %s991_s0, 256  ;;  %p599_p4 = scmp.lt.u32.totalorder %s887_s7, %s991_s0 }
  0x4d   : > { %p596_p0 = pnand %p595_p12, %p594_p11  ;;  %p600_p13 = scmp.lt.u32.totalorder %s598_s25, %s593_s10 }
  0x4e   : > { %p602_p10 = scmp.lt.u32.totalorder %s593_s10, %s887_s7 }
  0x4f   : > { %p597_p1 = pneg %p596_p0  ;;  %p601_p6 = por %p600_p13, %p599_p4 }
  0x51   : > { %p603_p3 = por %p602_p10, %p601_p6 }
  0x53   : > { %p604_p5 = pnand %p603_p3, %p597_p1 }
  0x55   : > { %607 = shalt.err (!%p604_p5)
}
  0x56   : > { %s608_s28 = scalar_lea.vmem %s895_s8, 128  ;;  %s715_s5 = smov [#allocation2]  }
  0x57   : > { %p609_p9 = scmp.ne.s32.totalorder %s895_s8, %s608_s28  ;;  %s613_s6 = sshll.u32 %s715_s5, 4  ;;  %s614_s6 = int_to_ptr.vmem [resolvable:$false] %s613_s6 }
  0x58   : > { %s615_s21 = scalar_lea.vmem %s614_s6, 256  ;;  %p616_p7 = scmp.lt.s32.totalorder %s895_s8, %s614_s6 }
  0x59   : > { %p611_p11 = pnand %p609_p9, %p595_p12  ;;  %p617_p4 = scmp.lt.s32.totalorder %s615_s21, %s608_s28 }
  0x5b   : > { %p612_p0 = pneg %p611_p11  ;;  %p618_p13 = por %p617_p4, %p616_p7 }
  0x5d   : > { %p619_p6 = pnand %p618_p13, %p612_p0 }
  0x5f   : > { %622 = shalt.err (!%p619_p6)
}
  0x60   : > { %470 = dma.hbm_to_vmem [thread:$0]  (!%p891_p2), %s887_s7, 128, %s895_s8, %s173_s9  }
  0x61   : > { %193 = sbr.rel (%p793_p8) target bundleno = 347 (0x15b), region = 32  ;;  %s925_s10 = sand.u32 (!%p793_p8), 1, %s693_s13  }
  0x62   : > { %s425_s11 = sshll.u32 (!%p793_p8), %s925_s10, 3  ;;  %s196_s19 = scalar_lea.sflag (!%p793_p8), [#allocation3], %s925_s10 }
  0x63   : > { %s199_s25 = scalar_lea.vmem (!%p793_p8), [#allocation2], %s425_s11  ;;  %p1007_p7 = scmp.ne.s32.totalorder (!%p793_p8), %s1001_s22, 0 }
  0x68   : > { %676 = dma.done.wait (%p1007_p7), %s196_s19, 128  }
  0x69   : > { %678 = vsyncadd (%p1007_p7), %s196_s19, 4294967168  ;;  %p1008_p12 = scmp.ne.s32.totalorder %s999_s20, 0 }
  0x6b   : > { %680 = dma.done.wait (%p1008_p12), [#allocation6], 272  }
  0x6c   : > { %682 = vsyncadd (%p1008_p12), [#allocation6], 4294967024  ;;  %v716_v0 = vmov 0.0   ;;  %vm717_vm0 = vmmov 0   ;;  %v535_v1 = vld [vmem:[#allocation5] sm:$0xff]   ;;  %v536_v2 = vld [vmem:[#allocation5 + $0x8] sm:$0xff]  }
  0x6d   : > { %440 = vmatprep.subr.bf16.mxu0 %v716_v0  ;;  %444 = vmatprep.mubr.msk.bf16.mxu0 %vm717_vm0, %v716_v0  ;;  %v231_v3 = vld [vmem:[%s199_s25] sm:$0xff]  ;;  %vm256_vm1 = vcmask 261120   ;;  %s428_s22 = sshll.u32 %s925_s10, 2  ;;  %s434_s20 = sshll.u32 %s701_s15, 6 }
  0x6e   : > { %441 = vmatpush3.bf16.msra.mxu0 %v535_v1  ;;  %v232_v4 = vpack.c.bf16 %v231_v3, %v231_v3  ;;  %v429_v5 = vld [vmem:[#allocation7] ss:$0 sm:$0xff]  ;;  %s229_s24 = scalar_lea.vmem [#allocation8], %s428_s22  ;;  %s942_s9 = scalar_lea.hbm %s994_s3, %s434_s20 }
  0x6f   : > { %442 = vmatprep.subr.bf16.mxu0 %v716_v0  ;;  %s317_s7 = sshll.u32 %s229_s24, 4  ;;  %s303_s29 = scalar_lea.sflag [#allocation4], %s925_s10  ;;  %s944_s7 = int_to_ptr.vmem [resolvable:$true] %s317_s7 }
  0x70   : > { %s623_s15 = scalar_lea.vmem %s944_s7, 64  ;;  %p1009_p2 = scmp.ne.s32.totalorder %s1005_s27, 0 }
  0x71   : > { %p624_p8 = scmp.ne.s32.totalorder %s944_s7, %s623_s15  ;;  %s718_s30 = smov [#allocation8]  }
  0x72   : > { %443 = vmatpush3.bf16.msra.mxu0 %v536_v2  ;;  %s627_s28 = sshll.u32 %s718_s30, 4  ;;  %s628_s28 = int_to_ptr.vmem [resolvable:$false] %s627_s28 }
  0x73   : > { %p625_p1 = pnand %p624_p8, %p1009_p2  ;;  %s629_s5 = scalar_lea.vmem %s628_s28, 128 }
  0x74   : > { %p630_p3 = scmp.lt.s32.totalorder %s944_s7, %s628_s28  ;;  %p631_p5 = scmp.lt.s32.totalorder %s629_s5, %s623_s15 }
  0x75   : > { %445 = vmatmul.mubr.msk.bf16.vlgmr.msra.gmra.mrb[0].mxu0 %vm256_vm1, %v232_v4  ;;  %p626_p10 = pneg %p625_p1 }
  0x76   : > { %p632_p9 = por %p631_p5, %p630_p3 }
  0x78   : > { %p633_p11 = pnand %p632_p9, %p626_p10 }
 0x148   : > { %v294_v6 = vpop.f32.mrb[0].mxu0 }
 0x149   : > { %v295_v7 = vadd.f32 %v429_v5, %v294_v6  ;;  %v446_v8 = vpop.f32.mrb[1].mxu0 }
 0x14a   : > { %v297_v9 = vpop.f32.mrb[2].mxu0 }
 0x14b   : > { %v300_v10 = vpack.c.bf16 %v295_v7, %v295_v7  ;;  %v447_v11 = vpop.f32.mrb[3].mxu0 }
 0x14d   : > { %301 = vst [vmem:[%s229_s24] sm:$0xf] %v300_v10 }
 0x14e   : > { %636 = shalt.err (!%p633_p11)
}
 0x14f   : > { %s637_s6 = scalar_lea.hbm %s942_s9, 64  ;;  %s641_s11 = scalar_lea.hbm %s994_s3, 128 }
 0x150   : > { %p638_p0 = scmp.ne.s32.totalorder %s942_s9, %s637_s6  ;;  %p642_p6 = scmp.lt.u32.totalorder %s942_s9, %s994_s3 }
 0x151   : > { %p643_p7 = scmp.lt.u32.totalorder %s641_s11, %s637_s6  ;;  %p645_p8 = scmp.lt.u32.totalorder %s637_s6, %s942_s9 }
 0x152   : > { %p639_p4 = pnand %p638_p0, %p1009_p2 }
 0x153   : > { %p644_p12 = por %p643_p7, %p642_p6 }
 0x154   : > { %p640_p13 = pneg %p639_p4 }
 0x155   : > { %p646_p1 = por %p645_p8, %p644_p12 }
 0x157   : > { %p647_p10 = pnand %p646_p1, %p640_p13 }
 0x159   : > { %650 = shalt.err (!%p647_p10)
}
 0x15a   : > { %458 = dma.vmem_to_hbm [thread:$0]  (%p1009_p2), %s944_s7, 64, %s942_s9, %s303_s29  }
 0x15b PF: > { %s329_s22 = sand.u32 1, %s689_s12   ;;  %p1010_p3 = scmp.ne.s32.totalorder %s1002_s23, 0 }
 0x15c   : > { %p1011_p5 = scmp.ge.s32.totalorder %s709_s17, 2  ;;  %s330_s20 = scalar_lea.sflag [#allocation4], %s329_s22 }
 0x15e   : > { %p472_p9 = pnand %p1011_p5, %p1010_p3 }
 0x160   : > { %684 = dma.done.wait (!%p472_p9), %s330_s20, 64  }
 0x161   : > { %686 = vsyncadd (!%p472_p9), %s330_s20, 4294967232  ;;  %s20_s17 = sadd.s32 1, %s709_s17   ;;  %s1012_s12 = smov %s693_s13 }
 0x162   : > { %p17_p11 = scmp.ge.s32.totalorder %s20_s17, 4   ;;  %s1013_s13 = smov %s697_s14 }
 0x163   : > { %s1014_s14 = smov %s882_s4  ;;  %s1015_s15 = smov %s705_s16 }
 0x164   : > { %s1016_s16 = smov %s1018_s18  ;;  %19 = sbr.rel (!%p17_p11) target bundleno = 7 (0x7), region = 85 }
 0x16b   :  { %335 = vsyncpa [#allocation3], 1 }
 0x16c   :  { %337 = vsyncpa [#allocation3 + $0x1], 1 }
 0x16d   :  { %338 = vsyncpa [#allocation6], 1 }
 0x16e   :  { %339 = vsyncpa [#allocation4], 1 }
 0x16f   :  { %341 = vsyncpa [#allocation4 + $0x1], 1 }

</bundles_post_ra>
